<compile_context>
chip_gen: v7x
topology: tpu7x:2x2x1
jax: 0.10.0
libtpu: 0.0.40
codegen_flags: <defaults>
</compile_context>

<pallas_src>
import functools

import jax
import jax.numpy as jnp
from jax.experimental import pallas as pl
from jax.experimental.pallas import tpu as pltpu


def _opt_kernel(w_ref, mask_ref, wwp_ref, params_ref, prop_ref,
                pred_ref, wp_ref, ploss_ref, *, block_rows, batch_size):
    w = w_ref[...].astype(jnp.float32)            # (TB, D)
    mask = mask_ref[...].astype(jnp.float32)      # (TB, P, D)  narrow-dtype DMA
    wwp = wwp_ref[...].astype(jnp.float32)        # (P, D)  stacked wp_lin weights
    params = params_ref[...]                      # (3, P)  f32, resident
    prop = prop_ref[...].astype(jnp.float32)      # (TB, P)

    bwp = params[0:1, :]        # (1, P)  wp_lin biases
    aplus1 = params[1:2, :]     # (1, P)  property_lin weight + 1 (precomputed)
    bprop = params[2:3, :]      # (1, P)  property_lin biases

    # Fused masked projection: one (TB, P, D) elementwise chain + lane reduce.
    # wp[b, p] = <w[b]*mask[b,p], wwp[p]> + bwp[p]
    wp = jnp.sum(w[:, None, :] * mask * wwp[None, :, :], axis=-1) + bwp  # (TB, P)

    # prop_pred = prop_lin(wp) + wp = (a+1)*wp + b
    pred = aplus1 * wp + bprop                                           # (TB, P)

    wp_ref[...] = wp.astype(wp_ref.dtype)
    pred_ref[...] = pred.astype(pred_ref.dtype)

    diff = prop - pred
    sq = diff * diff
    if batch_size % block_rows != 0:
        # Mask padded rows of the last (partial) tile out of the loss.
        i = pl.program_id(0)
        row = i * block_rows + jax.lax.broadcasted_iota(jnp.int32, sq.shape, 0)
        sq = jnp.where(row < batch_size, sq, 0.0)
    # Per-tile partial loss -> its own output block (keeps the grid "parallel").
    ploss_ref[...] = jnp.sum(sq, axis=(0, 1), keepdims=True)[None]


def _choose_block_rows(B, P, D, mask_itemsize):
    """Pick a batch tile: big enough to hide per-step overhead, small enough
    that a double-buffered mask tile fits comfortably in v7x's VMEM."""
    budget = 8 * 1024 * 1024                      # per pipeline buffer (mask tile)
    tb = budget // max(1, P * D * mask_itemsize)
    tb = int(max(8, min(tb, 1024)))
    if tb >= B:
        return B
    return max(8, (tb // 8) * 8)                  # multiple of 8 sublanes


def optimization_forward(w, mask, wwp_weight, wwp_bias, prop_weight, prop_bias,
                         prop, *, block_rows=None):
    """Returns (prop_pred, loss, w, prop_pred, wp) mirroring the torch module.

    wp is returned as a single (B, P) array (column i == torch's wp[i] of
    shape (B, 1))."""
    B, P = prop.shape
    D = w.shape[1]
    assert mask.shape == (B, P, D)

    if block_rows is None:
        block_rows = _choose_block_rows(B, P, D, jnp.dtype(mask.dtype).itemsize)
    tb = int(min(block_rows, B))
    grid = pl.cdiv(B, tb)

    # Pack tiny per-property scalars into one resident block; fold the "+1".
    params = jnp.stack([
        jnp.asarray(wwp_bias, jnp.float32).reshape(P),
        jnp.asarray(prop_weight, jnp.float32).reshape(P) + 1.0,
        jnp.asarray(prop_bias, jnp.float32).reshape(P),
    ]).astype(jnp.float32)                        # (3, P)

    kernel = functools.partial(_opt_kernel, block_rows=tb, batch_size=B)

    out_shapes = (
        jax.ShapeDtypeStruct((B, P), jnp.float32),         # prop_pred
        jax.ShapeDtypeStruct((B, P), jnp.float32),         # wp
        jax.ShapeDtypeStruct((grid, 1, 1), jnp.float32),   # per-tile loss partials
    )

    pred, wp, ploss = pl.pallas_call(
        kernel,
        out_shape=out_shapes,
        grid=(grid,),
        in_specs=[
            pl.BlockSpec((tb, D), lambda i: (i, 0)),        # w (native dtype)
            pl.BlockSpec((tb, P, D), lambda i: (i, 0, 0)),  # mask (native dtype)
            pl.BlockSpec((P, D), lambda i: (0, 0)),         # stacked wp_lin weights
            pl.BlockSpec((3, P), lambda i: (0, 0)),         # packed scalars
            pl.BlockSpec((tb, P), lambda i: (i, 0)),        # prop
        ],
        out_specs=(
            pl.BlockSpec((tb, P), lambda i: (i, 0)),        # prop_pred
            pl.BlockSpec((tb, P), lambda i: (i, 0)),        # wp
            pl.BlockSpec((1, 1, 1), lambda i: (i, 0, 0)),   # loss partials
        ),
        compiler_params=pltpu.CompilerParams(
            dimension_semantics=("parallel",),              # megacore-friendly
            vmem_limit_bytes=32 * 1024 * 1024,              # v7x-safe scoped limit
        ),
    )(
        w,             # no wrapper-side f32 force-cast; kernel casts as needed
        mask,
        wwp_weight,
        params,
        prop,
    )

    loss = jnp.sum(ploss) / B                               # GLOBAL batch size
    return pred, loss, w, pred, wp


def _reference(w, mask, wwp_weight, wwp_bias, prop_weight, prop_bias, prop):
    B = w.shape[0]
    maskf = mask.astype(jnp.float32)
    wm = w[:, None, :] * maskf                              # (B, P, D)
    wp = jnp.einsum("bpd,pd->bp", wm, wwp_weight) + wwp_bias[None, :]
    pred = (prop_weight[None, :] + 1.0) * wp + prop_bias[None, :]
    loss = jnp.sum((prop - pred) ** 2) / B
    return pred, loss, wp


if __name__ == "__main__":
    # Small shapes consistent with the module.
    batch_size, dim_w, num_prop = 8, 32, 4

    key = jax.random.PRNGKey(0)
    (k_w, k_mask, k_ww, k_wb, k_pw, k_pb, k_prop,
     k_w2, k_m2, k_p2) = jax.random.split(key, 10)

    # Deterministic synthetic parameters (stand-ins for model.decoder weights).
    w_param = jax.random.normal(k_w, (batch_size, dim_w), jnp.float32)
    wwp_weight = jax.random.normal(k_ww, (num_prop, dim_w), jnp.float32) * 0.1
    wwp_bias = jax.random.normal(k_wb, (num_prop,), jnp.float32) * 0.1
    prop_weight = jax.random.normal(k_pw, (num_prop,), jnp.float32) * 0.1
    prop_bias = jax.random.normal(k_pb, (num_prop,), jnp.float32) * 0.1

    # mask is 0/1 -> ship it as bf16 (exact values, half the HBM traffic).
    mask = (jax.random.uniform(k_mask, (batch_size, num_prop, dim_w)) > 0.5
            ).astype(jnp.bfloat16)
    prop = jax.random.normal(k_prop, (batch_size, num_prop), jnp.float32)

    pred, loss, w_out, pred2, wp = jax.block_until_ready(
        optimization_forward(w_param, mask, wwp_weight, wwp_bias,
                             prop_weight, prop_bias, prop))

    ref_pred, ref_loss, ref_wp = _reference(w_param, mask, wwp_weight, wwp_bias,
                                            prop_weight, prop_bias, prop)

    assert pred.shape == (batch_size, num_prop)
    assert wp.shape == (batch_size, num_prop)
    assert jnp.allclose(pred, ref_pred, atol=1e-5, rtol=1e-5)
    assert jnp.allclose(wp, ref_wp, atol=1e-5, rtol=1e-5)
    assert jnp.allclose(loss, ref_loss, atol=1e-4, rtol=1e-5)
    assert jnp.allclose(w_out, w_param)

    # Also exercise the multi-tile grid path (incl. a partial last tile + the
    # in-kernel loss-row masking) at a still-small size.
    B2 = 20
    w2 = jax.random.normal(k_w2, (B2, dim_w), jnp.float32)
    mask2 = (jax.random.uniform(k_m2, (B2, num_prop, dim_w)) > 0.5
             ).astype(jnp.bfloat16)
    prop2 = jax.random.normal(k_p2, (B2, num_prop), jnp.float32)
    pred_g, loss_g, _, _, wp_g = jax.block_until_ready(
        optimization_forward(w2, mask2, wwp_weight, wwp_bias,
                             prop_weight, prop_bias, prop2, block_rows=8))
    rp, rl, rwp = _reference(w2, mask2, wwp_weight, wwp_bias,
                             prop_weight, prop_bias, prop2)
    assert jnp.allclose(pred_g, rp, atol=1e-5, rtol=1e-5)
    assert jnp.allclose(wp_g, rwp, atol=1e-5, rtol=1e-5)
    assert jnp.allclose(loss_g, rl, atol=1e-4, rtol=1e-5)

    print("KERNEL_OK")
</pallas_src>

<mosaic_0001>
module attributes {stable_mosaic.version = 11 : i64} {
  func.func @_opt_kernel(%arg0: i32, %arg1: memref<8x32xf32, #tpu.memory_space<vmem>>, %arg2: memref<8x4x32xbf16, #tpu.memory_space<vmem>>, %arg3: memref<4x32xf32, #tpu.memory_space<vmem>>, %arg4: memref<3x4xf32, #tpu.memory_space<vmem>>, %arg5: memref<8x4xf32, #tpu.memory_space<vmem>>, %arg6: memref<8x4xf32, #tpu.memory_space<vmem>>, %arg7: memref<8x4xf32, #tpu.memory_space<vmem>>, %arg8: memref<1x1x1xf32, #tpu.memory_space<vmem>>) attributes {dimension_semantics = [#tpu.dimension_semantics<parallel>], iteration_bounds = array<i64: 1>, scalar_prefetch = 0 : i64, scratch_operands = 0 : i64, tpu.core_type = #tpu.core_type<tc>, window_params = [{transform_indices = @transform_0, window_bounds = array<i64: 8, 32>}, {transform_indices = @transform_1, window_bounds = array<i64: 8, 4, 32>}, {pipeline_mode = #tpu.pipeline_mode<synchronous>, transform_indices = @transform_2, window_bounds = array<i64: 4, 32>}, {pipeline_mode = #tpu.pipeline_mode<synchronous>, transform_indices = @transform_3, window_bounds = array<i64: 3, 4>}, {transform_indices = @transform_4, window_bounds = array<i64: 8, 4>}, {transform_indices = @transform_5, window_bounds = array<i64: 8, 4>}, {transform_indices = @transform_6, window_bounds = array<i64: 8, 4>}, {transform_indices = @transform_7, window_bounds = array<i64: 1, 1, 1>}]} {
    %c0 = arith.constant 0 : index
    %c0_0 = arith.constant 0 : index
    %0 = vector.load %arg1[%c0, %c0_0] : memref<8x32xf32, #tpu.memory_space<vmem>>, vector<8x32xf32>
    %c0_1 = arith.constant 0 : index
    %c0_2 = arith.constant 0 : index
    %c0_3 = arith.constant 0 : index
    %1 = vector.load %arg2[%c0_1, %c0_2, %c0_3] : memref<8x4x32xbf16, #tpu.memory_space<vmem>>, vector<8x4x32xbf16>
    %2 = arith.extf %1 : vector<8x4x32xbf16> to vector<8x4x32xf32>
    %c0_4 = arith.constant 0 : index
    %c0_5 = arith.constant 0 : index
    %3 = vector.load %arg3[%c0_4, %c0_5] : memref<4x32xf32, #tpu.memory_space<vmem>>, vector<4x32xf32>
    %c0_6 = arith.constant 0 : index
    %c0_7 = arith.constant 0 : index
    %4 = vector.load %arg4[%c0_6, %c0_7] : memref<3x4xf32, #tpu.memory_space<vmem>>, vector<3x4xf32>
    %c0_8 = arith.constant 0 : index
    %c0_9 = arith.constant 0 : index
    %5 = vector.load %arg5[%c0_8, %c0_9] : memref<8x4xf32, #tpu.memory_space<vmem>>, vector<8x4xf32>
    %6 = vector.extract_strided_slice %4 {offsets = [0, 0], sizes = [1, 4], strides = [1, 1]} : vector<3x4xf32> to vector<1x4xf32>
    %7 = vector.extract_strided_slice %4 {offsets = [1, 0], sizes = [1, 4], strides = [1, 1]} : vector<3x4xf32> to vector<1x4xf32>
    %8 = vector.extract_strided_slice %4 {offsets = [2, 0], sizes = [1, 4], strides = [1, 1]} : vector<3x4xf32> to vector<1x4xf32>
    %9 = vector.shape_cast %0 : vector<8x32xf32> to vector<8x1x32xf32>
    %10 = vector.broadcast %9 : vector<8x1x32xf32> to vector<8x4x32xf32>
    %11 = arith.mulf %10, %2 : vector<8x4x32xf32>
    %12 = vector.shape_cast %3 : vector<4x32xf32> to vector<1x4x32xf32>
    %13 = vector.broadcast %12 : vector<1x4x32xf32> to vector<8x4x32xf32>
    %14 = arith.mulf %11, %13 : vector<8x4x32xf32>
    %cst = arith.constant dense<0.000000e+00> : vector<8x4xf32>
    %15 = vector.multi_reduction <add>, %14, %cst [2] : vector<8x4x32xf32> to vector<8x4xf32>
    %16 = vector.broadcast %6 : vector<1x4xf32> to vector<8x4xf32>
    %17 = arith.addf %15, %16 : vector<8x4xf32>
    %18 = vector.broadcast %7 : vector<1x4xf32> to vector<8x4xf32>
    %19 = arith.mulf %18, %17 : vector<8x4xf32>
    %20 = vector.broadcast %8 : vector<1x4xf32> to vector<8x4xf32>
    %21 = arith.addf %19, %20 : vector<8x4xf32>
    %c0_10 = arith.constant 0 : index
    %c0_11 = arith.constant 0 : index
    %22 = vector.load %arg7[%c0_10, %c0_11] : memref<8x4xf32, #tpu.memory_space<vmem>>, vector<8x4xf32>
    tpu.vector_store %arg7[%c0_10, %c0_11], %17 {strides = array<i32>} : memref<8x4xf32, #tpu.memory_space<vmem>>, vector<8x4xf32>,
    %c0_12 = arith.constant 0 : index
    %c0_13 = arith.constant 0 : index
    %23 = vector.load %arg6[%c0_12, %c0_13] : memref<8x4xf32, #tpu.memory_space<vmem>>, vector<8x4xf32>
    tpu.vector_store %arg6[%c0_12, %c0_13], %21 {strides = array<i32>} : memref<8x4xf32, #tpu.memory_space<vmem>>, vector<8x4xf32>,
    %24 = arith.subf %5, %21 : vector<8x4xf32>
    %25 = arith.mulf %24, %24 : vector<8x4xf32>
    %26 = vector.shape_cast %25 : vector<8x4xf32> to vector<1x8x4xf32>
    %cst_14 = arith.constant dense<0.000000e+00> : vector<1xf32>
    %27 = vector.multi_reduction <add>, %26, %cst_14 [1, 2] : vector<1x8x4xf32> to vector<1xf32>
    %28 = vector.shape_cast %27 : vector<1xf32> to vector<1x1x1xf32>
    %29 = vector.extract %28[0, 0, 0] : f32 from vector<1x1x1xf32>
    %30 = vector.broadcast %29 : f32 to vector<1x1xf32>
    %31 = vector.shape_cast %30 : vector<1x1xf32> to vector<1x1x1xf32>
    %c0_15 = arith.constant 0 : index
    %c0_16 = arith.constant 0 : index
    %c0_17 = arith.constant 0 : index
    %32 = vector.load %arg8[%c0_15, %c0_16, %c0_17] : memref<1x1x1xf32, #tpu.memory_space<vmem>>, vector<1x1x1xf32>
    tpu.vector_store %arg8[%c0_15, %c0_16, %c0_17], %31 {strides = array<i32>} : memref<1x1x1xf32, #tpu.memory_space<vmem>>, vector<1x1x1xf32>,
    return
  }
  func.func @transform_0(%arg0: i32) -> (i32, i32) {
    %c0_i32 = arith.constant 0 : i32
    %c0_i32_0 = arith.constant 0 : i32
    return %arg0, %c0_i32 : i32, i32
  }
  func.func @transform_1(%arg0: i32) -> (i32, i32, i32) {
    %c0_i32 = arith.constant 0 : i32
    %c0_i32_0 = arith.constant 0 : i32
    %c0_i32_1 = arith.constant 0 : i32
    return %arg0, %c0_i32, %c0_i32_0 : i32, i32, i32
  }
  func.func @transform_2(%arg0: i32) -> (i32, i32) {
    %c0_i32 = arith.constant 0 : i32
    %c0_i32_0 = arith.constant 0 : i32
    %c0_i32_1 = arith.constant 0 : i32
    return %c0_i32, %c0_i32_0 : i32, i32
  }
  func.func @transform_3(%arg0: i32) -> (i32, i32) {
    %c0_i32 = arith.constant 0 : i32
    %c0_i32_0 = arith.constant 0 : i32
    %c0_i32_1 = arith.constant 0 : i32
    return %c0_i32, %c0_i32_0 : i32, i32
  }
  func.func @transform_4(%arg0: i32) -> (i32, i32) {
    %c0_i32 = arith.constant 0 : i32
    %c0_i32_0 = arith.constant 0 : i32
    return %arg0, %c0_i32 : i32, i32
  }
  func.func @transform_5(%arg0: i32) -> (i32, i32) {
    %c0_i32 = arith.constant 0 : i32
    %c0_i32_0 = arith.constant 0 : i32
    return %arg0, %c0_i32 : i32, i32
  }
  func.func @transform_6(%arg0: i32) -> (i32, i32) {
    %c0_i32 = arith.constant 0 : i32
    %c0_i32_0 = arith.constant 0 : i32
    return %arg0, %c0_i32 : i32, i32
  }
  func.func @transform_7(%arg0: i32) -> (i32, i32, i32) {
    %c0_i32 = arith.constant 0 : i32
    %c0_i32_0 = arith.constant 0 : i32
    %c0_i32_1 = arith.constant 0 : i32
    return %arg0, %c0_i32, %c0_i32_0 : i32, i32, i32
  }
}

</mosaic_0001>

<bundles_post_ra>
// kernel: tpu_custom_call.1
= control target key start
LH: loop header
LB: loop body
LE: loop exit
PB: predicated region body
PF: predicated region fallthrough
CT: control target
= control target key end

     0   :  { %13 = vsyncpa [#allocation3], 0  ;;  %s518_s0 = inlined_call_operand.vmem [shape: f32[8,32], index: 0, kind: input, shape index: {}]   ;;  %s519_s1 = inlined_call_operand.hbm [shape: bf16[8,4,32], index: 1, kind: input, shape index: {}]   ;;  %s520_s2 = inlined_call_operand.vmem [shape: f32[4,32], index: 2, kind: input, shape index: {}]   ;;  %s521_s3 = inlined_call_operand.vmem [shape: f32[3,4], index: 3, kind: input, shape index: {}]   ;;  %s522_s4 = inlined_call_operand.vmem [shape: f32[8,4], index: 4, kind: input, shape index: {}]   ;;  %s523_s5 = inlined_call_operand.vmem [shape: f32[8,4], index: 5, kind: output, shape index: {0}]   ;;  %s524_s6 = inlined_call_operand.vmem [shape: f32[8,4], index: 6, kind: output, shape index: {1}]   ;;  %s525_s7 = inlined_call_operand.hbm [shape: f32[1,1,1], index: 7, kind: output, shape index: {2}]  }
   0x1   :  { %14 = vsyncpa [#allocation4], 0  ;;  %s397_s24 = smov [#allocation2]   ;;  %s349_s28 = scalar_lea.hbm %s519_s1, 256 }
   0x2   :  { %s22_s25 = sshll.u32 %s397_s24, 4  ;;  %p350_p0 = scmp.ne.s32.totalorder %s519_s1, %s349_s28  ;;  %s23_s25 = int_to_ptr.vmem [resolvable:$true] %s22_s25 }
   0x3   :  { %p353_p1 = scmp.lt.u32.totalorder %s349_s28, %s519_s1 }
   0x5   :  { %p355_p2 = pnand %p353_p1, %p350_p0 }
   0x7   :  { %358 = shalt.err (!%p355_p2)
}
   0x8   :  { %s359_s10 = scalar_lea.vmem %s23_s25, 256  ;;  %p364_p4 = scmp.lt.s32.totalorder %s23_s25, %s23_s25 }
   0x9   :  { %p360_p3 = scmp.ne.s32.totalorder %s23_s25, %s359_s10  ;;  %p365_p5 = scmp.lt.s32.totalorder %s359_s10, %s359_s10 }
   0xb   :  { %p366_p6 = por %p365_p5, %p364_p4 }
   0xd   :  { %p367_p7 = pnand %p366_p6, %p360_p3 }
   0xf   :  { %370 = shalt.err (!%p367_p7)
}
  0x10   :  { %s398_s11 = smov 32   ;;  %s399_s12 = smov 2  }
  0x11   :  { %28 = dma.hbm_to_vmem [thread:$0]  %s519_s1, 256, %s23_s25, [#allocation3], %s398_s11, %s398_s11, %s399_s12  }
  0x12   :  { %393 = dma.done.wait [#allocation3], 256  }
  0x13   :  { %394 = vsyncadd [#allocation3], 4294967040  ;;  %v63_v0 = vlaneseq  ;;  %v400_v1 = vmov 1966171168   ;;  %v38_v6 = vld [vmem:[%s518_s0] sm:$0xff]  ;;  %vm164_vm0 = vcmask 257024  }
  0x14   :  { %v61_v2 = vunpack.c.l.s4 %v400_v1  ;;  %v39_v7 = vld [vmem:[#allocation2] sm:$0x3]  ;;  %v59_v10 = vcombine.high %v38_v6, %v38_v6  ;;  %v41_v11 = vld [vmem:[#allocation2 + $0x4] sm:$0x3]  ;;  %v40_v12 = vld [vmem:[#allocation2 + $0x2] sm:$0x3] }
  0x15   :  { %v456_v3 = vshrl.u32 %v63_v0, 7  ;;  %v42_v13 = vld [vmem:[#allocation2 + $0x6] sm:$0x3]  ;;  %v47_v14 = vunpack.c.l.bf16 %v39_v7  ;;  %v43_v17 = vld [vmem:[#allocation2 + $0x8] sm:$0x3]  ;;  %v49_v21 = vunpack.c.l.bf16 %v41_v11  ;;  %v48_v22 = vunpack.c.l.bf16 %v40_v12 }
  0x16   :  { %v62_v4 = vunpack.c.0.s8 %v61_v2  ;;  %v45_v19 = vld [vmem:[#allocation2 + $0xc] sm:$0x3]  ;;  %v44_v20 = vld [vmem:[#allocation2 + $0xa] sm:$0x3]  ;;  %v50_v23 = vunpack.c.l.bf16 %v42_v13  ;;  %v46_v28 = vld [vmem:[#allocation2 + $0xe] sm:$0x3]  ;;  %v51_v30 = vunpack.c.l.bf16 %v43_v17 }
  0x17   :  { %v463_v8 = vsub.s32 0, %v456_v3  ;;  %v55_v29 = vld [vmem:[%s520_s2] sm:$0xf]  ;;  %v53_v31 = vunpack.c.l.bf16 %v45_v19  ;;  %v52_v32 = vunpack.c.l.bf16 %v44_v20  ;;  %v54_v41 = vunpack.c.l.bf16 %v46_v28 }
  0x18   :  { %v65_v5 = vsub.s32 %v62_v4, %v456_v3  ;;  %v401_v11 = vmov 0   ;;  %vm276_vm1 = vcmask 1041409   ;;  %vm278_vm2 = vcmask 1042434  }
  0x19   :  { %347 = vset.pattern.permute.xlu0 %v401_v11  ;;  %346 = vset.pattern.permute.xlu1 %v401_v11  ;;  %vm280_vm3 = vcmask 1043459   ;;  %vm282_vm4 = vcmask 1044484   ;;  %vm284_vm5 = vcmask 1045509   ;;  %vm286_vm6 = vcmask 1046534  }
  0x1a   :  { %v66_v9 = vrot.slane %v38_v6, %v65_v5  ;;  %v73_v18 = vrot.slane %v59_v10, %v65_v5  ;;  %vm288_vm7 = vcmask 1047559   ;;  %vm297_vm8 = vcmask 31744  }
  0x1b   :  { %vm313_vm9 = vcmask 0  }
  0x1c   :  { %v82_v15 = vrot.slane %v66_v9, %v65_v5  ;;  %v74_v16 = vcombine.high %v66_v9, %v66_v9  ;;  %v89_v27 = vrot.slane %v73_v18, %v65_v5  ;;  %v75_v33 = vcombine.high %v73_v18, %v73_v18  ;;  %v487_v9 = vld [vmem:[%s521_s3] sm:$0x7] }
  0x1d   :  { %v192_v10 = vrot.slane %v487_v9, %v463_v8 }
  0x1e   :  { %v111_v24 = vrot.slane %v82_v15, %v463_v8  ;;  %v104_v25 = vcombine.high %v82_v15, %v82_v15  ;;  %v96_v26 = vrot.slane %v74_v16, %v65_v5  ;;  %v127_v38 = vrot.slane %v89_v27, %v463_v8 }
  0x1f   :  { %v105_v39 = vcombine.high %v89_v27, %v89_v27  ;;  %v103_v40 = vrot.slane %v75_v33, %v65_v5 }
  0x20   :  { %v148_v34 = vmul.f32 %v111_v24, %v47_v14  ;;  %v119_v35 = vrot.slane %v104_v25, %v463_v8  ;;  %v115_v36 = vrot.slane %v96_v26, %v463_v8  ;;  %v106_v37 = vcombine.high %v96_v26, %v96_v26 }
  0x21   :  { %v152_v46 = vmul.f32 %v127_v38, %v51_v30  ;;  %v135_v47 = vrot.slane %v105_v39, %v463_v8  ;;  %v131_v48 = vrot.slane %v103_v40, %v463_v8  ;;  %v107_v49 = vcombine.high %v103_v40, %v103_v40 }
  0x22   :  { %v156_v42 = vmul.f32 %v148_v34, %v55_v29  ;;  %v150_v43 = vmul.f32 %v119_v35, %v49_v21  ;;  %v149_v44 = vmul.f32 %v115_v36, %v48_v22  ;;  %v123_v45 = vrot.slane %v106_v37, %v463_v8 }
  0x23   :  { %v160_v54 = vmul.f32 %v152_v46, %v55_v29  ;;  %v153_v55 = vmul.f32 %v131_v48, %v52_v32  ;;  %v139_v56 = vrot.slane %v107_v49, %v463_v8  ;;  %v154_v60 = vmul.f32 %v135_v47, %v53_v31 }
  0x24   :  { %v165_v50 = vsel %vm164_vm0, %v156_v42, 0.0  ;;  %v158_v51 = vmul.f32 %v150_v43, %v55_v29  ;;  %v157_v52 = vmul.f32 %v149_v44, %v55_v29  ;;  %v151_v53 = vmul.f32 %v123_v45, %v50_v23 }
  0x25   :  { %166 = vadd.xlane.f32.xlu0 %v165_v50  ;;  %v161_v62 = vmul.f32 %v153_v55, %v55_v29  ;;  %v155_v63 = vmul.f32 %v139_v56, %v54_v41  ;;  %v177_v1 = vsel %vm164_vm0, %v160_v54, 0.0  ;;  %v162_v2 = vmul.f32 %v154_v60, %v55_v29 }
  0x26   :  { %v171_v57 = vsel %vm164_vm0, %v158_v51, 0.0  ;;  %v168_v58 = vsel %vm164_vm0, %v157_v52, 0.0  ;;  %v159_v59 = vmul.f32 %v151_v53, %v55_v29  ;;  %v208_v42 = vsub.s32 1, %v456_v3 }
  0x27   :  { %172 = vadd.xlane.f32.xlu1 %v171_v57  ;;  %v180_v4 = vsel %vm164_vm0, %v161_v62, 0.0  ;;  %v163_v5 = vmul.f32 %v155_v63, %v55_v29  ;;  %v183_v6 = vsel %vm164_vm0, %v162_v2, 0.0  ;;  %v243_v29 = vand.u32 127, %v63_v0 }
  0x28   :  { %v174_v61 = vsel %vm164_vm0, %v159_v59, 0.0  ;;  %v294_v46 = vsub.s32 2, %v456_v3  ;;  %v209_v49 = vrot.slane %v487_v9, %v208_v42 }
  0x29   :  { %169 = vadd.xlane.f32.xlu0 %v168_v58  ;;  %v186_v7 = vsel %vm164_vm0, %v163_v5, 0.0  ;;  %v246_v31 = vsub.s32 %v243_v29, %v456_v3  ;;  %v57_v3 = vld [vmem:[%s522_s4] sm:$0xff] }
  0x2a   :  { %v295_v53 = vrot.slane %v487_v9, %v294_v46 }
  0x2b   :  { %175 = vadd.xlane.f32.xlu1 %v174_v61 }
  0x2d   :  { %178 = vadd.xlane.f32.xlu0 %v177_v1 }
  0x2f   :  { %181 = vadd.xlane.f32.xlu1 %v180_v4 }
  0x31   :  { %184 = vadd.xlane.f32.xlu0 %v183_v6 }
  0x33   :  { %187 = vadd.xlane.f32.xlu1 %v186_v7 }
  0x47   :  { %195 = vbcast.lane.b32.xlu0 %v192_v10, 256 }
  0xb2   :  { %v167_v12 = vpop.xlane.xlu0 %166 }
  0xb4   :  { %v173_v15 = vpop.xlane.xlu1 %172 }
  0xb6   :  { %v170_v13 = vpop.xlane.xlu0 %169 }
  0xb8   :  { %v176_v17 = vpop.xlane.xlu1 %175 }
  0xba   :  { %v179_v14 = vpop.xlane.xlu0 %178 }
  0xbc   :  { %v182_v23 = vpop.xlane.xlu1 %181 }
  0xbe   :  { %v185_v16 = vpop.xlane.xlu0 %184 }
  0xc0   :  { %v188_v26 = vpop.xlane.xlu1 %187 }
  0xc2   :  { %v196_v18 = vpop.permute.xlu0 %195 }
  0xc3   :  { %v201_v19 = vadd.f32 %v196_v18, %v176_v17  ;;  %v198_v20 = vadd.f32 %v196_v18, %v167_v12  ;;  %v204_v21 = vadd.f32 %v196_v18, %v185_v16  ;;  %v199_v22 = vadd.f32 %v196_v18, %v170_v13 }
  0xc4   :  { %v200_v8 = vadd.f32 %v196_v18, %v173_v15  ;;  %v202_v24 = vadd.f32 %v196_v18, %v179_v14  ;;  %v203_v25 = vadd.f32 %v196_v18, %v182_v23  ;;  %v205_v27 = vadd.f32 %v196_v18, %v188_v26 }
  0xc5   :  { %228 = vperm.xlu0 %347, %v201_v19   ;;  %219 = vperm.xlu1 %346, %v198_v20  }
  0xc9   :  { %237 = vperm.xlu0 %347, %v204_v21   ;;  %222 = vperm.xlu1 %346, %v199_v22  }
  0xcd   :  { %225 = vperm.xlu1 %346, %v200_v8  }
  0xd1   :  { %231 = vperm.xlu1 %346, %v202_v24  }
  0xd5   :  { %234 = vperm.xlu1 %346, %v203_v25  }
  0xd9   :  { %240 = vperm.xlu1 %346, %v205_v27  }
 0x144   :  { %v220_v28 = vpop.permute.xlu1 %219  ;;  %v229_v35 = vpop.permute.xlu0 %228 }
 0x145   :  { %v247_v36 = vrot.slane %v220_v28, %v246_v31  ;;  %v259_v41 = vrot.slane %v229_v35, %v246_v31 }
 0x148   :  { %v223_v30 = vpop.permute.xlu1 %222  ;;  %v238_v43 = vpop.permute.xlu0 %237 }
 0x149   :  { %v251_v33 = vrot.slane %v223_v30, %v246_v31  ;;  %v271_v50 = vrot.slane %v238_v43, %v246_v31 }
 0x14b   :  { %v277_v38 = vsel %vm276_vm1, %v251_v33, %v247_v36 }
 0x14c   :  { %v226_v32 = vpop.permute.xlu1 %225 }
 0x14d   :  { %v255_v34 = vrot.slane %v226_v32, %v246_v31 }
 0x14f   :  { %v279_v39 = vsel %vm278_vm2, %v255_v34, %v277_v38 }
 0x150   :  { %v232_v37 = vpop.permute.xlu1 %231  ;;  %v281_v44 = vsel %vm280_vm3, %v259_v41, %v279_v39 }
 0x151   :  { %v263_v40 = vrot.slane %v232_v37, %v246_v31 }
 0x153   :  { %v283_v47 = vsel %vm282_vm4, %v263_v40, %v281_v44 }
 0x154   :  { %v235_v0 = vpop.permute.xlu1 %234 }
 0x155   :  { %v267_v45 = vrot.slane %v235_v0, %v246_v31 }
 0x157   :  { %v285_v48 = vsel %vm284_vm5, %v267_v45, %v283_v47 }
 0x158   :  { %v241_v51 = vpop.permute.xlu1 %240  ;;  %v287_v54 = vsel %vm286_vm6, %v271_v50, %v285_v48 }
 0x159   :  { %v275_v52 = vrot.slane %v241_v51, %v246_v31 }
 0x15b   :  { %v289_v55 = vsel %vm288_vm7, %v275_v52, %v287_v54 }
 0x15c   :  { %v291_v56 = vmul.f32 %v289_v55, %v209_v49  ;;  %298 = vst.msk [vmem:[%s524_s6] sm:$0xff] %vm297_vm8, %v289_v55  ;;  %s402_s6 = smov [#allocation5]  }
 0x15d   :  { %s325_s23 = sshll.u32 %s402_s6, 4  ;;  %s326_s23 = int_to_ptr.vmem [resolvable:$true] %s325_s23 }
 0x15e   :  { %v296_v57 = vadd.f32 %v295_v53, %v291_v56  ;;  %s371_s24 = scalar_lea.vmem %s326_s23, 16  ;;  %p376_p9 = scmp.lt.s32.totalorder %s326_s23, %s326_s23 }
 0x15f   :  { %p372_p8 = scmp.ne.s32.totalorder %s326_s23, %s371_s24 }
 0x160   :  { %v300_v58 = vsub.f32 %v57_v3, %v296_v57  ;;  %299 = vst.msk [vmem:[%s523_s5] sm:$0xff] %vm297_vm8, %v296_v57  ;;  %s375_s5 = scalar_lea.vmem %s326_s23, 32 }
 0x161   :  { %p377_p10 = scmp.lt.s32.totalorder %s375_s5, %s371_s24 }
 0x162   :  { %v301_v59 = vmul.f32 %v300_v58, %v300_v58 }
 0x163   :  { %p378_p11 = por %p377_p10, %p376_p9 }
 0x164   :  { %v302_v60 = vsel %vm297_vm8, %v301_v59, 0.0 }
 0x165   :  { %303 = vadd.xlane.f32.xlu0 %v302_v60  ;;  %p379_p12 = pnand %p378_p11, %p372_p8 }
 0x1f2   :  { %v304_v61 = vpop.xlane.xlu0 %303 }
 0x1f3   :  { %v305_v62 = vrot.slane %v304_v61, 4 }
 0x1f5   :  { %v306_v63 = vadd.f32 %v305_v62, %v304_v61 }
 0x1f7   :  { %v307_v1 = vrot.slane %v306_v63, 2 }
 0x1f9   :  { %v308_v2 = vadd.f32 %v307_v1, %v306_v63 }
 0x1fb   :  { %v309_v4 = vrot.slane %v308_v2, 1 }
 0x1fd   :  { %v310_v5 = vadd.f32 %v309_v4, %v308_v2 }
 0x1ff   :  { %338 = vpush %v310_v5 }
 0x230   :  { %s339_s4 = spop %338 }
 0x231   :  { %v312_v6 = vstv %s339_s4 }
 0x232   :  { %314 = vst.msk [vmem:[#allocation5] sm:$0x1] %vm313_vm9, %v312_v6 }
 0x233   :  { %382 = shalt.err (!%p379_p12)
}
 0x234   :  { %s383_s27 = scalar_lea.hbm %s525_s7, 16 }
 0x235   :  { %p384_p13 = scmp.ne.s32.totalorder %s525_s7, %s383_s27  ;;  %p387_p0 = scmp.lt.u32.totalorder %s383_s27, %s525_s7 }
 0x237   :  { %p389_p1 = pnand %p387_p0, %p384_p13 }
 0x239   :  { %392 = shalt.err (!%p389_p1)
}
 0x23a   :  { %328 = dma.vmem_to_hbm [thread:$0]  %s326_s23, 16, %s525_s7, [#allocation4]  }
 0x23b   :  { %395 = dma.done.wait [#allocation4], 16  }
 0x23c   :  { %396 = vsyncadd [#allocation4], 4294967280 }
 0x23d   :  { %336 = vsyncpa [#allocation3], 1 }
 0x23e   :  { %337 = vsyncpa [#allocation4], 1 }

</bundles_post_ra>
